<compile_context>
chip_gen: v7x
topology: tpu7x:2x2x1
jax: 0.10.0
libtpu: 0.0.40
codegen_flags: <defaults>
</compile_context>

<pallas_src>
import jax
import jax.numpy as jnp
from jax import lax
from jax.experimental import pallas as pl
from jax.experimental.pallas import tpu as pltpu


def _linear_min_sub_kernel(x_ref, w_ref, b_ref, o_ref):
    # x_ref: (B, K) f32, w_ref: (N, K) f32 (native nn.Linear layout),
    # b_ref: (1, N) f32 with the constant already folded in (bias - c).
    y = lax.dot_general(
        x_ref[...],
        w_ref[...],
        dimension_numbers=(((1,), (1,)), ((), ())),  # contract K with K -> (B, N)
        preferred_element_type=jnp.float32,
    )
    # min(y + bias, c) - c == min(y + (bias - c), 0)
    o_ref[...] = jnp.minimum(y + b_ref[...], 0.0).astype(o_ref.dtype)


@jax.jit
def linear_min_sub(x, weight, bias, constant):
    """Computes min(x @ weight.T + bias, constant) - constant."""
    B, K = x.shape
    N = weight.shape[0]

    c = jnp.asarray(constant, dtype=jnp.float32)
    b_fold = (bias.astype(jnp.float32) - c).reshape(1, N)

    return pl.pallas_call(
        _linear_min_sub_kernel,
        out_shape=jax.ShapeDtypeStruct((B, N), x.dtype),
        in_specs=[
            pl.BlockSpec(memory_space=pltpu.MemorySpace.VMEM),  # x      (B, K)
            pl.BlockSpec(memory_space=pltpu.MemorySpace.VMEM),  # weight (N, K)
            pl.BlockSpec(memory_space=pltpu.MemorySpace.VMEM),  # bias'  (1, N)
        ],
        out_specs=pl.BlockSpec(memory_space=pltpu.MemorySpace.VMEM),
        compiler_params=pltpu.CompilerParams(
            # Let the tiny (bias - c) producer fuse into the operand instead of
            # materializing in HBM around an overhead-bound kernel.
            allow_input_fusion=[True, True, True],
        ),
    )(x.astype(jnp.float32), weight.astype(jnp.float32), b_fold)


if __name__ == "__main__":
    in_features = 10
    out_features = 5
    constant = 2.0
    batch = 8

    key = jax.random.PRNGKey(0)
    kx, kw, kb = jax.random.split(key, 3)

    # Deterministic parameter init (mimic nn.Linear's uniform(-1/sqrt(K), 1/sqrt(K))).
    bound = 1.0 / (in_features ** 0.5)
    x = jax.random.normal(kx, (batch, in_features), dtype=jnp.float32)
    linear_weight = jax.random.uniform(
        kw, (out_features, in_features), minval=-bound, maxval=bound,
        dtype=jnp.float32)
    linear_bias = jax.random.uniform(
        kb, (out_features,), minval=-bound, maxval=bound, dtype=jnp.float32)

    out = linear_min_sub(x, linear_weight, linear_bias, constant)
    out = jax.block_until_ready(out)

    # Reference check in plain JAX.
    ref = jnp.minimum(x @ linear_weight.T + linear_bias, constant) - constant
    assert out.shape == (batch, out_features)
    assert jnp.allclose(out, ref, atol=1e-5, rtol=1e-5)
    print("KERNEL_OK")
</pallas_src>

<mosaic_0001>
module attributes {stable_mosaic.version = 11 : i64} {
  func.func @_linear_min_sub_kernel(%arg0: memref<8x10xf32, #tpu.memory_space<vmem>>, %arg1: memref<5x10xf32, #tpu.memory_space<vmem>>, %arg2: memref<1x5xf32, #tpu.memory_space<vmem>>, %arg3: memref<8x5xf32, #tpu.memory_space<vmem>>) attributes {dimension_semantics = [], scalar_prefetch = 0 : i64, scratch_operands = 0 : i64, tpu.core_type = #tpu.core_type<tc>} {
    %c0 = arith.constant 0 : index
    %c0_0 = arith.constant 0 : index
    %0 = vector.load %arg0[%c0, %c0_0] : memref<8x10xf32, #tpu.memory_space<vmem>>, vector<8x10xf32>
    %c0_1 = arith.constant 0 : index
    %c0_2 = arith.constant 0 : index
    %1 = vector.load %arg1[%c0_1, %c0_2] : memref<5x10xf32, #tpu.memory_space<vmem>>, vector<5x10xf32>
    %cst = arith.constant dense<0.000000e+00> : vector<8x5xf32>
    %2 = tpu.matmul %0, %1, %cst {dimension_numbers = #tpu.dot_dimension_numbers<[1], [1], [0], [0], [0, 0, 1, 0], [], []>} : vector<8x10xf32>, vector<5x10xf32>, vector<8x5xf32> -> vector<8x5xf32>
    %c0_3 = arith.constant 0 : index
    %c0_4 = arith.constant 0 : index
    %3 = vector.load %arg2[%c0_3, %c0_4] : memref<1x5xf32, #tpu.memory_space<vmem>>, vector<1x5xf32>
    %4 = vector.broadcast %3 : vector<1x5xf32> to vector<8x5xf32>
    %5 = arith.addf %2, %4 : vector<8x5xf32>
    %cst_5 = arith.constant 0.000000e+00 : f32
    %6 = vector.broadcast %cst_5 : f32 to vector<8x5xf32>
    %7 = arith.minimumf %5, %6 : vector<8x5xf32>
    %c0_6 = arith.constant 0 : index
    %c0_7 = arith.constant 0 : index
    %8 = vector.load %arg3[%c0_6, %c0_7] : memref<8x5xf32, #tpu.memory_space<vmem>>, vector<8x5xf32>
    tpu.vector_store %arg3[%c0_6, %c0_7], %7 {strides = array<i32>} : memref<8x5xf32, #tpu.memory_space<vmem>>, vector<8x5xf32>,
    return
  }
}

</mosaic_0001>

<bundles_post_ra>
// kernel: linear_min_sub.2
= control target key start
LH: loop header
LB: loop body
LE: loop exit
PB: predicated region body
PF: predicated region fallthrough
CT: control target
= control target key end

     0   :  { %s312_s0 = inlined_call_operand.hbm [shape: f32[8,10], index: 0, kind: input, shape index: {}]   ;;  %s313_s1 = inlined_call_operand.hbm [shape: f32[5,10], index: 1, kind: input, shape index: {}]   ;;  %s314_s2 = inlined_call_operand.vmem [shape: f32[5], index: 2, kind: input, shape index: {}]   ;;  %s315_s3 = inlined_call_operand.<no memory space> [shape: f32[], index: 3, kind: input, shape index: {}]   ;;  %s316_s4 = inlined_call_operand.hbm [shape: f32[8,5], index: 4, kind: output, shape index: {}]  }
   0x1   :  { %v9_v0 = vstv %s315_s3 }
   0x2   :  { %10 = vsyncpa [#allocation3], 0 }
   0x3   :  { %11 = vsyncpa [#allocation6], 0 }
   0x4   :  { %12 = vsyncpa [#allocation4], 0  ;;  %s240_s17 = smov [#allocation2]   ;;  %s241_s19 = smov [#allocation5]  }
   0x5   :  { %s19_s18 = sshll.u32 %s240_s17, 4  ;;  %s29_s20 = sshll.u32 %s241_s19, 4  ;;  %s20_s18 = int_to_ptr.vmem [resolvable:$true] %s19_s18  ;;  %s30_s20 = int_to_ptr.vmem [resolvable:$true] %s29_s20 }
   0x6   :  { %s168_s23 = scalar_lea.hbm %s312_s0, 128 }
   0x7   :  { %p169_p0 = scmp.ne.s32.totalorder %s312_s0, %s168_s23  ;;  %p172_p1 = scmp.lt.u32.totalorder %s168_s23, %s312_s0 }
   0x9   :  { %p174_p2 = pnand %p172_p1, %p169_p0 }
   0xb   :  { %177 = shalt.err (!%p174_p2)
}
   0xc   :  { %s178_s3 = scalar_lea.vmem %s20_s18, 128  ;;  %p183_p4 = scmp.lt.s32.totalorder %s20_s18, %s20_s18 }
   0xd   :  { %p179_p3 = scmp.ne.s32.totalorder %s20_s18, %s178_s3  ;;  %p184_p5 = scmp.lt.s32.totalorder %s178_s3, %s178_s3 }
   0xf   :  { %p185_p6 = por %p184_p5, %p183_p4 }
  0x11   :  { %p186_p7 = pnand %p185_p6, %p179_p3 }
  0x13   :  { %189 = shalt.err (!%p186_p7)
}
  0x14   :  { %22 = dma.hbm_to_vmem [thread:$0]  %s312_s0, 128, %s20_s18, [#allocation3]  }
  0x15   :  { %s190_s6 = scalar_lea.hbm %s313_s1, 128 }
  0x16   :  { %p191_p8 = scmp.ne.s32.totalorder %s313_s1, %s190_s6  ;;  %p194_p9 = scmp.lt.u32.totalorder %s190_s6, %s313_s1 }
  0x18   :  { %p196_p10 = pnand %p194_p9, %p191_p8 }
  0x1a   :  { %199 = shalt.err (!%p196_p10)
}
  0x1b   :  { %s200_s11 = scalar_lea.vmem %s30_s20, 128  ;;  %p205_p12 = scmp.lt.s32.totalorder %s30_s20, %s30_s20 }
  0x1c   :  { %p201_p11 = scmp.ne.s32.totalorder %s30_s20, %s200_s11  ;;  %p206_p13 = scmp.lt.s32.totalorder %s200_s11, %s200_s11 }
  0x1e   :  { %p207_p0 = por %p206_p13, %p205_p12 }
  0x20   :  { %p208_p1 = pnand %p207_p0, %p201_p11 }
  0x22   :  { %211 = shalt.err (!%p208_p1)
}
  0x23   :  { %32 = dma.hbm_to_vmem [thread:$0]  %s313_s1, 128, %s30_s20, [#allocation6]  }
  0x24   :  { %234 = dma.done.wait [#allocation3], 128  }
  0x25   :  { %235 = vsyncadd [#allocation3], 4294967168 }
  0x26   :  { %236 = dma.done.wait [#allocation6], 128  }
  0x27   :  { %237 = vsyncadd [#allocation6], 4294967168  ;;  %v242_v1 = vmov 0.0   ;;  %vm243_vm0 = vmmov 0   ;;  %vm57_vm1 = vcmask 80896   ;;  %v48_v5 = vld [vmem:[#allocation2] sm:$0xff] }
  0x28   :  { %158 = vmatprep.subr.mxu0 %v242_v1  ;;  %160 = vmatprep.mubr.msk.f32.mxu0 %vm243_vm0, %v242_v1  ;;  %v41_v2 = vld [vmem:[%s314_s2] sm:$0x1]  ;;  %v49_v3 = vld [vmem:[#allocation5] sm:$0x1f]  ;;  %s244_s1 = smov [#allocation7]   ;;  %vm135_vm2 = vcmask 39936  }
  0x29   :  { %v44_v4 = vsub.f32 %v41_v2, %v9_v0  ;;  %159 = vmatpush3.xpose.msk.msra.mxu0 %vm57_vm1, %v49_v3  ;;  %s143_s15 = sshll.u32 %s244_s1, 4  ;;  %s144_s15 = int_to_ptr.vmem [resolvable:$true] %s143_s15 }
  0x2a   :  { %s212_s16 = scalar_lea.vmem %s144_s15, 128  ;;  %p217_p3 = scmp.lt.s32.totalorder %s144_s15, %s144_s15 }
  0x2b   :  { %47 = vst [vmem:[#allocation8] sm:$0x1] %v44_v4  ;;  %p213_p2 = scmp.ne.s32.totalorder %s144_s15, %s212_s16  ;;  %p218_p4 = scmp.lt.s32.totalorder %s212_s16, %s212_s16 }
  0x2c   :  { %161 = vmatmul.mubr.msk.f32.vlgmr.msra.gmra.mrb[0].mxu0 %vm57_vm1, %v48_v5 }
  0x2d   :  { %p219_p5 = por %p218_p4, %p217_p3 }
  0x2f   :  { %p220_p6 = pnand %p219_p5, %p213_p2 }
  0x32   :  { %v153_v6 = vld [vmem:[#allocation8] ss:$0 sm:$0xff] }
  0xff   :  { %v130_v7 = vpop.f32.mrb[0].mxu0 }
 0x100   :  { %v131_v8 = vadd.f32 %v153_v6, %v130_v7  ;;  %v162_v9 = vpop.f32.mrb[1].mxu0 }
 0x102   :  { %v134_v10 = vmin.f32 %v131_v8, 0.0 }
 0x104   :  { %136 = vst.msk [vmem:[#allocation7] sm:$0xff] %vm135_vm2, %v134_v10 }
 0x105   :  { %223 = shalt.err (!%p220_p6)
}
 0x106   :  { %s224_s18 = scalar_lea.hbm %s316_s4, 128 }
 0x107   :  { %p225_p7 = scmp.ne.s32.totalorder %s316_s4, %s224_s18  ;;  %p228_p8 = scmp.lt.u32.totalorder %s224_s18, %s316_s4 }
 0x109   :  { %p230_p9 = pnand %p228_p8, %p225_p7 }
 0x10b   :  { %233 = shalt.err (!%p230_p9)
}
 0x10c   :  { %146 = dma.vmem_to_hbm [thread:$0]  %s144_s15, 128, %s316_s4, [#allocation4]  }
 0x10d   :  { %238 = dma.done.wait [#allocation4], 128  }
 0x10e   :  { %239 = vsyncadd [#allocation4], 4294967168 }
 0x10f   :  { %150 = vsyncpa [#allocation3], 1 }
 0x110   :  { %151 = vsyncpa [#allocation6], 1 }
 0x111   :  { %152 = vsyncpa [#allocation4], 1 }

</bundles_post_ra>
